<compile_context>
chip_gen: v5e
topology: v5e:2x2
jax: 0.10.0
libtpu: 0.0.40
codegen_flags: <defaults>
</compile_context>

<pallas_src>
import jax
import jax.numpy as jnp
from jax.experimental import pallas as pl
from jax.experimental.pallas import tpu as pltpu

NUM_STATES = 2
HIDDEN = 32
NUM_ACTIONS = 4

_LANE = 128                      # TPU lane width
_MAX_BATCH_TILE = 32768          # lanes per grid step (review: 1024 was >10x off roofline)
_VMEM_LIMIT_BYTES = 48 * 1024 * 1024


def _mlp_kernel(x_ref, w1_ref, b1_ref, w2_ref, b2_ref, o_ref):
    # x_ref:  (NUM_STATES, TB)      batch in lanes -> lane-dense loads
    # w1_ref: (HIDDEN, NUM_STATES)  PyTorch (out, in), used directly
    # b1_ref: (HIDDEN, 1)
    # w2_ref: (NUM_ACTIONS, HIDDEN)
    # b2_ref: (NUM_ACTIONS, 1)
    # o_ref:  (NUM_ACTIONS, TB)     lane-dense stores
    x = x_ref[...]

    # fc1 + ReLU: matmul on the (otherwise idle) MXU, bias-add + ReLU on VPU.
    h = jnp.dot(w1_ref[...], x, preferred_element_type=jnp.float32) + b1_ref[...]
    h = jnp.maximum(h, 0.0)

    # fc3 on the MXU.
    o_ref[...] = (
        jnp.dot(w2_ref[...], h, preferred_element_type=jnp.float32) + b2_ref[...]
    )


def _round_up(v, m):
    return -(-v // m) * m


def _batch_tiling(b):
    """Pick (tile, padded_batch).

    Big tiles amortize the ~0.35 us per-grid-step overhead; >=2 tiles whenever
    B > 128 so v7x's two TensorCores can split the 'parallel' axis; tile is
    derived from the actual batch so last-tile padding waste stays < 1 tile.
    """
    b128 = _round_up(max(b, 1), _LANE)
    if b128 <= _LANE:
        return _LANE, _LANE                      # one minimal tile; splitting not worth it
    n_tiles = max(2, -(-b128 // _MAX_BATCH_TILE))
    tb = min(_MAX_BATCH_TILE, _round_up(-(-b128 // n_tiles), _LANE))
    return tb, _round_up(b128, tb)


@jax.jit
def net_forward_fb(x_fb, w1, b1, w2, b2):
    """Forward in (features, batch) layout: x_fb (NUM_STATES, B) -> (NUM_ACTIONS, B).

    Preferred entry point: no transpose copies on either side of the
    pallas_call (which XLA cannot fuse into), so end-to-end HBM traffic is
    just the kernel's own reads/writes.
    """
    x_fb = jnp.asarray(x_fb, jnp.float32)
    w1 = jnp.asarray(w1, jnp.float32)                      # (HIDDEN, NUM_STATES), as-is
    w2 = jnp.asarray(w2, jnp.float32)                      # (NUM_ACTIONS, HIDDEN), as-is
    b1c = jnp.asarray(b1, jnp.float32).reshape(HIDDEN, 1)
    b2c = jnp.asarray(b2, jnp.float32).reshape(NUM_ACTIONS, 1)

    B = x_fb.shape[1]
    tb, b_pad = _batch_tiling(B)
    if b_pad != B:
        x_fb = jnp.pad(x_fb, ((0, 0), (0, b_pad - B)))

    cost = pl.CostEstimate(
        flops=2 * b_pad * (NUM_STATES * HIDDEN + HIDDEN * NUM_ACTIONS),
        transcendentals=0,
        bytes_accessed=4 * (
            NUM_STATES * b_pad + NUM_ACTIONS * b_pad
            + HIDDEN * NUM_STATES + HIDDEN
            + NUM_ACTIONS * HIDDEN + NUM_ACTIONS
        ),
    )

    out_fb = pl.pallas_call(
        _mlp_kernel,
        out_shape=jax.ShapeDtypeStruct((NUM_ACTIONS, b_pad), jnp.float32),
        grid=(b_pad // tb,),
        in_specs=[
            pl.BlockSpec((NUM_STATES, tb), lambda i: (0, i)),       # x tiles (lane-dense)
            pl.BlockSpec((HIDDEN, NUM_STATES), lambda i: (0, 0)),   # w1 VMEM-resident
            pl.BlockSpec((HIDDEN, 1), lambda i: (0, 0)),            # b1 VMEM-resident
            pl.BlockSpec((NUM_ACTIONS, HIDDEN), lambda i: (0, 0)),  # w2 VMEM-resident
            pl.BlockSpec((NUM_ACTIONS, 1), lambda i: (0, 0)),       # b2 VMEM-resident
        ],
        out_specs=pl.BlockSpec((NUM_ACTIONS, tb), lambda i: (0, i)),
        compiler_params=pltpu.CompilerParams(
            dimension_semantics=("parallel",),       # megacore split across v7x's 2 TCs
            vmem_limit_bytes=_VMEM_LIMIT_BYTES,      # headroom for 32K-lane tiles on v5e
        ),
        cost_estimate=cost,
    )(x_fb, w1, b1c, w2, b2c)

    if b_pad != B:
        out_fb = out_fb[:, :B]
    return out_fb


@jax.jit
def net_forward(x, w1, b1, w2, b2):
    """PyTorch-layout forward: x (B, NUM_STATES) -> (B, NUM_ACTIONS).

    The transposes here are separate XLA copy kernels (pallas_call does not
    fuse); performance-critical callers should keep activations in
    (features, batch) layout and call net_forward_fb directly.
    """
    out_fb = net_forward_fb(jnp.asarray(x, jnp.float32).T, w1, b1, w2, b2)
    return out_fb.T


def _reference_forward(x, w1, b1, w2, b2):
    h = jnp.maximum(x @ w1.T + b1, 0.0)
    return h @ w2.T + b2


if __name__ == "__main__":
    key = jax.random.PRNGKey(0)
    k_x, k_w1, k_b1, k_w2, k_b2, k_x2 = jax.random.split(key, 6)

    # Deterministic synthetic parameters mirroring the PyTorch init:
    #   weights ~ Normal(0, 0.1); biases ~ Uniform(-1/sqrt(fan_in), 1/sqrt(fan_in))
    w1 = 0.1 * jax.random.normal(k_w1, (HIDDEN, NUM_STATES), jnp.float32)
    b1 = jax.random.uniform(
        k_b1, (HIDDEN,), jnp.float32,
        minval=-1.0 / jnp.sqrt(NUM_STATES), maxval=1.0 / jnp.sqrt(NUM_STATES))
    w2 = 0.1 * jax.random.normal(k_w2, (NUM_ACTIONS, HIDDEN), jnp.float32)
    b2 = jax.random.uniform(
        k_b2, (NUM_ACTIONS,), jnp.float32,
        minval=-1.0 / jnp.sqrt(HIDDEN), maxval=1.0 / jnp.sqrt(HIDDEN))

    # Small-batch check (single 128-lane tile), PyTorch layout API.
    B = 8
    x = jax.random.normal(k_x, (B, NUM_STATES), jnp.float32)
    out = jax.block_until_ready(net_forward(x, w1, b1, w2, b2))
    ref = _reference_forward(x, w1, b1, w2, b2)
    assert out.shape == (B, NUM_ACTIONS)
    assert jnp.allclose(out, ref, atol=1e-5, rtol=1e-5), "mismatch vs reference (B=8)"

    # Multi-tile + padding check (B=200 -> two 128-lane tiles), feature-major API.
    B2 = 200
    x2 = jax.random.normal(k_x2, (B2, NUM_STATES), jnp.float32)
    out2_fb = jax.block_until_ready(net_forward_fb(x2.T, w1, b1, w2, b2))
    ref2 = _reference_forward(x2, w1, b1, w2, b2)
    assert out2_fb.shape == (NUM_ACTIONS, B2)
    assert jnp.allclose(out2_fb.T, ref2, atol=1e-5, rtol=1e-5), "mismatch vs reference (B=200)"

    print("KERNEL_OK")
</pallas_src>

<mosaic_0001>
module attributes {stable_mosaic.version = 11 : i64} {
  func.func @_mlp_kernel(%arg0: i32, %arg1: memref<2x128xf32, #tpu.memory_space<vmem>>, %arg2: memref<32x2xf32, #tpu.memory_space<vmem>>, %arg3: memref<32x1xf32, #tpu.memory_space<vmem>>, %arg4: memref<4x32xf32, #tpu.memory_space<vmem>>, %arg5: memref<4x1xf32, #tpu.memory_space<vmem>>, %arg6: memref<4x128xf32, #tpu.memory_space<vmem>>) attributes {dimension_semantics = [#tpu.dimension_semantics<parallel>], iteration_bounds = array<i64: 1>, scalar_prefetch = 0 : i64, scratch_operands = 0 : i64, tpu.core_type = #tpu.core_type<tc>, window_params = [{transform_indices = @transform_0, window_bounds = array<i64: 2, 128>}, {pipeline_mode = #tpu.pipeline_mode<synchronous>, transform_indices = @transform_1, window_bounds = array<i64: 32, 2>}, {pipeline_mode = #tpu.pipeline_mode<synchronous>, transform_indices = @transform_2, window_bounds = array<i64: 32, 1>}, {pipeline_mode = #tpu.pipeline_mode<synchronous>, transform_indices = @transform_3, window_bounds = array<i64: 4, 32>}, {pipeline_mode = #tpu.pipeline_mode<synchronous>, transform_indices = @transform_4, window_bounds = array<i64: 4, 1>}, {transform_indices = @transform_5, window_bounds = array<i64: 4, 128>}]} {
    %c0 = arith.constant 0 : index
    %c0_0 = arith.constant 0 : index
    %0 = vector.load %arg1[%c0, %c0_0] : memref<2x128xf32, #tpu.memory_space<vmem>>, vector<2x128xf32>
    %c0_1 = arith.constant 0 : index
    %c0_2 = arith.constant 0 : index
    %1 = vector.load %arg2[%c0_1, %c0_2] : memref<32x2xf32, #tpu.memory_space<vmem>>, vector<32x2xf32>
    %cst = arith.constant dense<0.000000e+00> : vector<32x128xf32>
    %2 = tpu.matmul %1, %0, %cst {dimension_numbers = #tpu.dot_dimension_numbers<[1], [0], [0], [1], [0, 0, 1, 1], [], []>} : vector<32x2xf32>, vector<2x128xf32>, vector<32x128xf32> -> vector<32x128xf32>
    %c0_3 = arith.constant 0 : index
    %c0_4 = arith.constant 0 : index
    %3 = vector.load %arg3[%c0_3, %c0_4] : memref<32x1xf32, #tpu.memory_space<vmem>>, vector<32x1xf32>
    %4 = vector.broadcast %3 : vector<32x1xf32> to vector<32x128xf32>
    %5 = arith.addf %2, %4 : vector<32x128xf32>
    %cst_5 = arith.constant 0.000000e+00 : f32
    %6 = vector.broadcast %cst_5 : f32 to vector<32x128xf32>
    %7 = arith.maximumf %5, %6 : vector<32x128xf32>
    %c0_6 = arith.constant 0 : index
    %c0_7 = arith.constant 0 : index
    %8 = vector.load %arg4[%c0_6, %c0_7] : memref<4x32xf32, #tpu.memory_space<vmem>>, vector<4x32xf32>
    %cst_8 = arith.constant dense<0.000000e+00> : vector<4x128xf32>
    %9 = tpu.matmul %8, %7, %cst_8 {dimension_numbers = #tpu.dot_dimension_numbers<[1], [0], [0], [1], [0, 0, 1, 1], [], []>} : vector<4x32xf32>, vector<32x128xf32>, vector<4x128xf32> -> vector<4x128xf32>
    %c0_9 = arith.constant 0 : index
    %c0_10 = arith.constant 0 : index
    %10 = vector.load %arg5[%c0_9, %c0_10] : memref<4x1xf32, #tpu.memory_space<vmem>>, vector<4x1xf32>
    %11 = vector.broadcast %10 : vector<4x1xf32> to vector<4x128xf32>
    %12 = arith.addf %9, %11 : vector<4x128xf32>
    %c0_11 = arith.constant 0 : index
    %c0_12 = arith.constant 0 : index
    %13 = vector.load %arg6[%c0_11, %c0_12] : memref<4x128xf32, #tpu.memory_space<vmem>>, vector<4x128xf32>
    tpu.vector_store %arg6[%c0_11, %c0_12], %12 {strides = array<i32>} : memref<4x128xf32, #tpu.memory_space<vmem>>, vector<4x128xf32>,
    return
  }
  func.func @transform_0(%arg0: i32) -> (i32, i32) {
    %c0_i32 = arith.constant 0 : i32
    %c0_i32_0 = arith.constant 0 : i32
    return %c0_i32, %arg0 : i32, i32
  }
  func.func @transform_1(%arg0: i32) -> (i32, i32) {
    %c0_i32 = arith.constant 0 : i32
    %c0_i32_0 = arith.constant 0 : i32
    %c0_i32_1 = arith.constant 0 : i32
    return %c0_i32, %c0_i32_0 : i32, i32
  }
  func.func @transform_2(%arg0: i32) -> (i32, i32) {
    %c0_i32 = arith.constant 0 : i32
    %c0_i32_0 = arith.constant 0 : i32
    %c0_i32_1 = arith.constant 0 : i32
    return %c0_i32, %c0_i32_0 : i32, i32
  }
  func.func @transform_3(%arg0: i32) -> (i32, i32) {
    %c0_i32 = arith.constant 0 : i32
    %c0_i32_0 = arith.constant 0 : i32
    %c0_i32_1 = arith.constant 0 : i32
    return %c0_i32, %c0_i32_0 : i32, i32
  }
  func.func @transform_4(%arg0: i32) -> (i32, i32) {
    %c0_i32 = arith.constant 0 : i32
    %c0_i32_0 = arith.constant 0 : i32
    %c0_i32_1 = arith.constant 0 : i32
    return %c0_i32, %c0_i32_0 : i32, i32
  }
  func.func @transform_5(%arg0: i32) -> (i32, i32) {
    %c0_i32 = arith.constant 0 : i32
    %c0_i32_0 = arith.constant 0 : i32
    return %c0_i32, %arg0 : i32, i32
  }
}

</mosaic_0001>

<bundles_post_ra>
// kernel: net_forward_fb.1
= control target key start
LH: loop header
LB: loop body
LE: loop exit
PB: predicated region body
PF: predicated region fallthrough
CT: control target
= control target key end

     0   :  { %vm63_vm0 = vcmask 1041408   ;;  %vm50_vm1 = vcmask 15360   ;;  %v187_v5 = vmov 0   ;;  %s259_s0 = inlined_call_operand.vmem [shape: f32[2,128], index: 0, kind: input, shape index: {}]   ;;  %s260_s1 = inlined_call_operand.vmem [shape: f32[32,2], index: 1, kind: input, shape index: {}]   ;;  %s261_s2 = inlined_call_operand.vmem [shape: f32[32,1], index: 2, kind: input, shape index: {}]   ;;  %s262_s3 = inlined_call_operand.vmem [shape: f32[4,32], index: 3, kind: input, shape index: {}]   ;;  %s263_s4 = inlined_call_operand.vmem [shape: f32[4,1], index: 4, kind: input, shape index: {}]   ;;  %s264_s5 = inlined_call_operand.hbm [shape: f32[4,128], index: 5, kind: output, shape index: {}]  }
   0x1   :  { %v21_v0 = vld [vmem:[%s259_s0] sm:$0x3]  ;;  %v23_v1 = vld [vmem:[%s260_s1 + $0x8] sm:$0xff]  ;;  %v25_v2 = vld [vmem:[%s260_s1 + $0x18] sm:$0xff]  ;;  %158 = vset.pattern.permute.xlu0 %v187_v5 }
   0x2   :  { %154 = vmatpush.msk.msra.mxu2 %vm63_vm0, %v21_v0  ;;  %155 = vmatpush.msk.msra.mxu3 %vm63_vm0, %v21_v0  ;;  %v29_v3 = vld [vmem:[%s261_s2 + $0x18] sm:$0xff]  ;;  %v22_v4 = vld [vmem:[%s260_s1] sm:$0xff]  ;;  %v27_v6 = vld [vmem:[%s261_s2 + $0x8] sm:$0xff] }
   0x3   :  { %150 = vmatmul.msk.f32.vlgmr.msra.gmra.mxu2 %vm50_vm1, %v23_v1  ;;  %152 = vmatmul.msk.f32.vlgmr.msra.gmra.mxu3 %vm50_vm1, %v25_v2 }
   0x4   :  { %148 = vmatpush.msk.msra.mxu0 %vm63_vm0, %v21_v0 }
   0x5   :  { %10 = vsyncpa [#allocation3], 0  ;;  %47 = vperm.xlu0 %158, %v29_v3   ;;  %149 = vmatmul.msk.f32.vlgmr.msra.gmra.mxu0 %vm50_vm1, %v22_v4  ;;  %v24_v7 = vld [vmem:[%s260_s1 + $0x10] sm:$0xff]  ;;  %v26_v9 = vld [vmem:[%s261_s2] sm:$0xff]  ;;  %vm107_vm2 = vcmask 261120   ;;  %s139_s15 = sshll.u32 %s264_s5, 4  ;;  %s140_s15 = int_to_ptr.hbm [resolvable:$true] %s139_s15 }
   0x6   :  { %159 = vset.pattern.permute.xlu1 %v187_v5  ;;  %160 = vset.pattern.permute.xlu2 %v187_v5  ;;  %v28_v8 = vld [vmem:[%s261_s2 + $0x10] sm:$0xff]  ;;  %v101_v10 = vld [vmem:[%s263_s4] sm:$0xf]  ;;  %s188_s4 = smov [#allocation2]  }
   0x7   :  { %37 = vperm.xlu1 %159, %v27_v6   ;;  %104 = vperm.xlu2 %160, %v101_v10   ;;  %v100_v27 = vld [vmem:[%s262_s3] sm:$0xf]  ;;  %s137_s12 = sshll.u32 %s188_s4, 4  ;;  %s138_s12 = int_to_ptr.vmem [resolvable:$true] %s137_s12 }
   0xb   :  { %151 = vmatmul.msk.f32.gmra.mxu2 %vm50_vm1, %v24_v7 }
   0xd   :  { %42 = vperm.xlu0 %158, %v28_v8  }
   0xf   :  { %32 = vperm.xlu1 %159, %v26_v9  }
  0x61   :  { %v105_v28 = vpop.permute.xlu2 %104 }
  0x77   :  { %v48_v11 = vpop.permute.xlu0 %47 }
  0x79   :  { %v38_v12 = vpop.permute.xlu1 %37 }
  0x7f   :  { %v43_v17 = vpop.permute.xlu0 %42 }
  0x81   :  { %v33_v18 = vpop.permute.xlu1 %32 }
  0x82   :  { %v84_v19 = vpop.f32.mrf.mxu0 }
  0x83   :  { %v85_v23 = vadd.f32 %v84_v19, %v33_v18 }
  0x85   :  { %v96_v26 = vmax.f32 %v85_v23, 0.0 }
  0x86   :  { %v87_v13 = vpop.f32.mrf.mxu2  ;;  %v93_v14 = vpop.f32.mrf.mxu3 }
  0x87   :  { %v94_v15 = vadd.f32 %v93_v14, %v48_v11  ;;  %v88_v21 = vadd.f32 %v87_v13, %v38_v12 }
  0x89   :  { %v99_v16 = vmax.f32 %v94_v15, 0.0  ;;  %v97_v25 = vmax.f32 %v88_v21, 0.0 }
  0x8b   :  { %123 = vmatpush.msra.mxu1 %v99_v16 }
  0x8e   :  { %v90_v20 = vpop.f32.mrf.mxu2 }
  0x8f   :  { %v91_v22 = vadd.f32 %v90_v20, %v43_v17 }
  0x91   :  { %v98_v24 = vmax.f32 %v91_v22, 0.0 }
  0x93   :  { %124 = vmatpush.msra.mxu1 %v98_v24 }
  0x95   :  { %125 = vmatpush.msra.mxu1 %v97_v25 }
  0x97   :  { %126 = vmatpush.msra.mxu1 %v96_v26 }
  0x98   :  { %153 = vmatmul.msk.f32.vlgmr.msra.gmra.mxu1 %vm107_vm2, %v100_v27 }
 0x115   :  { %v128_v29 = vpop.f32.mrf.mxu1 }
 0x116   :  { %v129_v30 = vadd.f32 %v128_v29, %v105_v28 }
 0x118   :  { %131 = vst [vmem:[#allocation2] sm:$0xf] %v129_v30 }
 0x119   :  { %142 = dma.vmem_to_hbm [thread:$0]  %s138_s12, 64, %s140_s15, [#allocation3]  }
 0x11a   :  { %185 = dma.done.wait [#allocation3], 64  }
 0x11b   :  { %186 = vsyncadd [#allocation3], 4294967232 }
 0x11c   :  { %147 = vsyncpa [#allocation3], 1 }

</bundles_post_ra>
